<compile_context>
chip_gen: v6e
topology: v6e:2x2x1
jax: 0.10.0
libtpu: 0.0.40
codegen_flags: <defaults>
</compile_context>

<pallas_src>
import functools
import math

import jax
import jax.numpy as jnp
from jax.experimental import pallas as pl
from jax.experimental.pallas import tpu as pltpu


def make_pe_table(vocab_size: int, d_model: int, dtype=jnp.float32) -> jax.Array:
    """Deterministic sinusoidal table, identical to the PyTorch __init__."""
    position = jnp.arange(vocab_size, dtype=jnp.float32)[:, None]              # (V, 1)
    div_term = jnp.exp(
        jnp.arange(0, d_model, 2, dtype=jnp.float32) * (-math.log(10000.0) / d_model)
    )                                                                          # (D/2,)
    ang = position * div_term                                                  # (V, D/2)
    pe = jnp.zeros((vocab_size, d_model), jnp.float32)
    pe = pe.at[:, 0::2].set(jnp.sin(ang))
    pe = pe.at[:, 1::2].set(jnp.cos(ang))
    return pe[None].astype(dtype)                                              # (1, V, D)


def _hash_u32(h):
    """lowbias32 finalizer: cheap, well-mixed 32-bit hash (VPU integer ops only)."""
    h = (h ^ (h >> jnp.uint32(16))) * jnp.uint32(0x7FEB352D)
    h = (h ^ (h >> jnp.uint32(15))) * jnp.uint32(0x846CA68B)
    return h ^ (h >> jnp.uint32(16))


def _posenc_kernel(seed_ref, x_ref, pe_ref, o_ref, *,
                   keep_threshold: int, inv_keep: float, apply_dropout: bool,
                   rows_per_tile: int, total_rows: int, cols: int):
    # x_ref / pe_ref / o_ref blocks are (1, TR, C); compute in the input dtype.
    y = x_ref[0] + pe_ref[0]                                        # (TR, C)

    if apply_dropout:
        r = pl.program_id(0)                                        # row-tile index
        b = pl.program_id(1)                                        # batch index
        row0 = (r * rows_per_tile).astype(jnp.uint32)
        rows = jax.lax.broadcasted_iota(jnp.uint32, y.shape, 0) + row0
        lanes = jax.lax.broadcasted_iota(jnp.uint32, y.shape, 1)
        # Unique per-element counter (wraps for astronomically large tensors).
        flat = (b.astype(jnp.uint32) * jnp.uint32(total_rows) + rows) \
               * jnp.uint32(cols) + lanes
        h = _hash_u32(flat ^ (seed_ref[0].astype(jnp.uint32) * jnp.uint32(0x9E3779B9)))
        # Integer threshold compare: P(keep) = 1 - p exactly (no f32 convert).
        keep = h >= jnp.uint32(keep_threshold)
        y = jnp.where(keep, y * jnp.asarray(inv_keep, y.dtype), jnp.zeros_like(y))

    o_ref[0] = y.astype(o_ref.dtype)


def _pick_row_tile(rows: int, cols: int, itemsize: int,
                   tile_budget_bytes: int = 2 << 20) -> int:
    """Largest row tile that is a multiple of 8 (or the full extent) and keeps
    one (tile_rows, cols) buffer under ~2 MiB.  With 3 arrays x 2 pipeline
    buffers this stays far below the 32 MiB default scoped VMEM (v6e/v7x)."""
    max_rows = max(8, tile_budget_bytes // max(1, cols * itemsize))
    if rows <= max_rows:
        return rows                                   # full extent: always legal
    limit = (min(max_rows, rows) // 8) * 8
    for t in range(limit, 7, -8):
        if rows % t == 0:
            return t
    return rows                                       # no clean divisor: one block


@functools.partial(jax.jit, static_argnames=("p", "training"))
def positional_encoding(x, pe, seed, *, p: float = 0.1, training: bool = True):
    """x: (B, S, D) float; pe: (1, V, D) with V >= S; seed: (1,) int32."""
    B, S, D = x.shape
    pe_s = pe[:, :S, :].astype(x.dtype)               # matches self.pe[:, :x.size(1), :]

    # Lane-dense view: fold (S, D) into (R, 128) rows when possible so the
    # output last dim presented to the kernel is 128-wide (unmasked stores).
    if D % 128 == 0:
        R, C = S, D
    elif (S * D) % 128 == 0:
        R, C = (S * D) // 128, 128
    else:
        R, C = S, D                                   # full-extent blocks, still legal
    xr = x.reshape(B, R, C)
    per = pe_s.reshape(1, R, C)

    TR = _pick_row_tile(R, C, jnp.dtype(x.dtype).itemsize)
    grid = (R // TR, B)                               # B innermost -> pe tile re-used

    apply_dropout = bool(training) and p > 0.0
    keep_threshold = min(int(round(p * 4294967296.0)), 4294967295)
    inv_keep = 1.0 / (1.0 - p) if apply_dropout else 1.0

    kern = functools.partial(
        _posenc_kernel,
        keep_threshold=keep_threshold, inv_keep=inv_keep,
        apply_dropout=apply_dropout,
        rows_per_tile=TR, total_rows=R, cols=C)

    out = pl.pallas_call(
        kern,
        out_shape=jax.ShapeDtypeStruct((B, R, C), x.dtype),
        grid_spec=pltpu.PrefetchScalarGridSpec(
            num_scalar_prefetch=1,                    # seed -> SMEM scalar
            grid=grid,
            in_specs=[
                pl.BlockSpec((1, TR, C), lambda r, b, seed: (b, r, 0)),   # x
                pl.BlockSpec((1, TR, C), lambda r, b, seed: (0, r, 0)),   # pe (bcast B)
            ],
            out_specs=pl.BlockSpec((1, TR, C), lambda r, b, seed: (b, r, 0)),
        ),
        compiler_params=pltpu.CompilerParams(
            # Stateless hash PRNG -> grid steps fully independent; both axes
            # can be sharded across TensorCores (v7x megacore).
            dimension_semantics=("parallel", "parallel"),
        ),
    )(seed, xr, per)
    return out.reshape(B, S, D)


if __name__ == "__main__":
    B, S, D = 2, 8, 32
    VOCAB = 128          # same construction as the module (default 5000), kept small
    P = 0.1

    key = jax.random.PRNGKey(0)
    x = jax.random.normal(key, (B, S, D), dtype=jnp.float32)
    pe = make_pe_table(VOCAB, D)
    seed = jnp.array([0], dtype=jnp.int32)

    ref = x + pe[:, :S, :]

    # Eval-mode path (dropout is identity) — exact match with the reference add.
    y_eval = positional_encoding(x, pe, seed, p=P, training=False)
    jax.block_until_ready(y_eval)
    assert jnp.allclose(y_eval, ref, atol=1e-5), "eval-mode mismatch"

    # Train-mode path (inverted dropout with an in-kernel stateless hash PRNG).
    # TODO(synk): PyTorch's dropout RNG stream cannot be bit-matched; the mask
    # here has the same Bernoulli(1-p) distribution and 1/(1-p) scaling.
    y_train = positional_encoding(x, pe, seed, p=P, training=True)
    jax.block_until_ready(y_train)
    assert y_train.shape == (B, S, D)
    scaled = ref / (1.0 - P)
    ok = jnp.where(y_train == 0, True, jnp.isclose(y_train, scaled, atol=1e-5))
    assert bool(ok.all()), "train-mode values are neither dropped nor scaled copies"

    print("KERNEL_OK")
</pallas_src>

<mosaic_0001>
module attributes {stable_mosaic.version = 11 : i64} {
  func.func @_posenc_kernel(%arg0: i32, %arg1: i32, %arg2: memref<1xi32, #tpu.memory_space<smem>>, %arg3: memref<1x2x128xf32, #tpu.memory_space<vmem>>, %arg4: memref<1x2x128xf32, #tpu.memory_space<vmem>>, %arg5: memref<1x2x128xf32, #tpu.memory_space<vmem>>) attributes {dimension_semantics = [#tpu.dimension_semantics<parallel>, #tpu.dimension_semantics<parallel>], iteration_bounds = array<i64: 1, 2>, scalar_prefetch = 1 : i64, scratch_operands = 0 : i64, tpu.core_type = #tpu.core_type<tc>, window_params = [{transform_indices = @transform_0, window_bounds = array<i64: 1, 2, 128>}, {transform_indices = @transform_1, window_bounds = array<i64: 1, 2, 128>}, {transform_indices = @transform_2, window_bounds = array<i64: 1, 2, 128>}]} {
    %c0 = arith.constant 0 : index
    %c0_0 = arith.constant 0 : index
    %c0_1 = arith.constant 0 : index
    %0 = vector.load %arg3[%c0, %c0_0, %c0_1] : memref<1x2x128xf32, #tpu.memory_space<vmem>>, vector<1x2x128xf32>
    %1 = vector.shape_cast %0 : vector<1x2x128xf32> to vector<2x128xf32>
    %c0_2 = arith.constant 0 : index
    %c0_3 = arith.constant 0 : index
    %c0_4 = arith.constant 0 : index
    %2 = vector.load %arg4[%c0_2, %c0_3, %c0_4] : memref<1x2x128xf32, #tpu.memory_space<vmem>>, vector<1x2x128xf32>
    %3 = vector.shape_cast %2 : vector<1x2x128xf32> to vector<2x128xf32>
    %4 = arith.addf %1, %3 : vector<2x128xf32>
    %c0_5 = arith.constant 0 : index
    %c0_6 = arith.constant 0 : index
    %c0_7 = arith.constant 0 : index
    %5 = vector.load %arg5[%c0_5, %c0_6, %c0_7] : memref<1x2x128xf32, #tpu.memory_space<vmem>>, vector<1x2x128xf32>
    %6 = vector.shape_cast %5 : vector<1x2x128xf32> to vector<2x128xf32>
    %7 = vector.shape_cast %4 : vector<2x128xf32> to vector<1x2x128xf32>
    tpu.vector_store %arg5[%c0_5, %c0_6, %c0_7], %7 {strides = array<i32>} : memref<1x2x128xf32, #tpu.memory_space<vmem>>, vector<1x2x128xf32>,
    return
  }
  func.func @transform_0(%arg0: i32, %arg1: i32, %arg2: memref<1xi32, #tpu.memory_space<smem>>) -> (i32, i32, i32) {
    %c0_i32 = arith.constant 0 : i32
    %c0_i32_0 = arith.constant 0 : i32
    return %arg1, %arg0, %c0_i32 : i32, i32, i32
  }
  func.func @transform_1(%arg0: i32, %arg1: i32, %arg2: memref<1xi32, #tpu.memory_space<smem>>) -> (i32, i32, i32) {
    %c0_i32 = arith.constant 0 : i32
    %c0_i32_0 = arith.constant 0 : i32
    %c0_i32_1 = arith.constant 0 : i32
    return %c0_i32, %arg0, %c0_i32_0 : i32, i32, i32
  }
  func.func @transform_2(%arg0: i32, %arg1: i32, %arg2: memref<1xi32, #tpu.memory_space<smem>>) -> (i32, i32, i32) {
    %c0_i32 = arith.constant 0 : i32
    %c0_i32_0 = arith.constant 0 : i32
    return %arg1, %arg0, %c0_i32 : i32, i32, i32
  }
}

</mosaic_0001>

<bundles_post_ra>
// kernel: positional_encoding.1
= control target key start
LH: loop header
LB: loop body
LE: loop exit
PB: predicated region body
PF: predicated region fallthrough
CT: control target
= control target key end

     0   :  { %s361_s12 = smov 0   ;;  %s333_s13 = smov 0   ;;  %s375_s0 = inlined_call_operand.<no memory space> [shape: s32[1], index: 0, kind: input, shape index: {}]   ;;  %s376_s1 = inlined_call_operand.vmem [shape: f32[2,2,128], index: 1, kind: input, shape index: {}]   ;;  %s377_s2 = inlined_call_operand.vmem [shape: f32[1,2,128], index: 2, kind: input, shape index: {}]   ;;  %s378_s3 = inlined_call_operand.vmem [shape: f32[2,2,128], index: 3, kind: output, shape index: {}]  }
   0x1   :  { %s337_s14 = smov 0  }
   0x2 LB: > { %s23_s0 = sadd.s32 1, %s335_s13  ;;  %p288_p0 = scmp.ge.s32.totalorder %s339_s14, 1  ;;  %s339_s14 = sphi %s337_s14, %s14_s14   ;;  %s335_s13 = sphi %s333_s13, %s334_s13   ;;  %s331_s12 = sphi %s361_s12, %s379_s12  }
   0x3   : > { %p24_p1 = scmp.ge.s32.totalorder %s23_s0, 2  ;;  %p141_p2 = scmp.lt.s32.totalorder %s339_s14, 3 }
   0x5   : > { %s381_s0 = smov (%p24_p1, %s23_s0), 0  ;;  %p142_p3 = pnand %p288_p0, %p141_p2 }
   0x6   : > { %p171_p4 = scmp.lt.s32.totalorder (!%p142_p3), %s331_s12, 1 }
   0x7   : > { %145 = sbr.rel (%p142_p3) target bundleno = 19 (0x13), region = 28 }
   0xc   : > { %s383_s12 = smov (!%p171_p4, %s331_s12), 1  ;;  %v190_v0 = vld [vmem:[%s377_s2] sm:$0x3] }
   0xd   : > { %s289_s15 = sshll.u32 %s383_s12, 1 }
   0xe   : > { %s177_s20 = scalar_lea.vmem %s376_s1, %s289_s15  ;;  %s188_s23 = scalar_lea.vmem %s378_s3, %s289_s15 }
   0xf   : > { %v189_v1 = vld [vmem:[%s177_s20] sm:$0x3] }
  0x10   : > { %v191_v2 = vadd.f32 %v190_v0, %v189_v1 }
  0x12   : > { %192 = vst [vmem:[%s188_s23] sm:$0x3] %v191_v2 }
  0x13 PF: > { %s14_s14 = sadd.s32 1, %s339_s14   ;;  %s379_s12 = smov %s335_s13 }
  0x14   : > { %p11_p5 = scmp.ge.s32.totalorder %s14_s14, 4   ;;  %s334_s13 = smov %s381_s0  }
  0x16   :  { %13 = sbr.rel (!%p11_p5) target bundleno = 2 (0x2), region = 61 }

</bundles_post_ra>
